<compile_context>
chip_gen: v7x
topology: tpu7x:2x2x1
jax: 0.10.0
libtpu: 0.0.40
codegen_flags: <defaults>
</compile_context>

<pallas_src>
import functools

import jax
import jax.numpy as jnp
from jax.experimental import pallas as pl
from jax.experimental.pallas import tpu as pltpu


# ----------------------------------------------------------------------------- kernels
def _normalize_scale_kernel(x_ref, w_ref, o_ref):
    """Row-wise L2 normalize + scale.  x_ref: (tm, dim), w_ref: (1, dim) resident."""
    x = x_ref[...].astype(jnp.float32)
    ssq = jnp.sum(x * x, axis=-1, keepdims=True)
    # rsqrt -> EUP (own VLIW slot).  1e-24 == (1e-12)^2 mirrors the PyTorch
    # F.normalize eps clamp on the norm (identical for zero rows).
    inv = jax.lax.rsqrt(jnp.maximum(ssq, 1e-24))
    o_ref[...] = (x * inv * w_ref[...].astype(jnp.float32)).astype(o_ref.dtype)


def _make_folded_kernel(dim, width):
    """Lane-folded variant for dim < 128 with dim | 128 (width == 128).

    g = width // dim logical rows are packed along the lane axis, so the tile is
    (tm, 128) and loads/stores are lane-dense (unmasked vst).  Per-logical-row
    squared sums are computed (and broadcast back within each lane segment) via a
    0/1 block-diagonal mask matmul on the otherwise-idle MXU.
    """
    def kernel(x_ref, w_ref, o_ref):
        # Same-segment test: (i // dim == j // dim)  <=>  ((i ^ j) < dim) for pow2 dim.
        # Rebuilt every grid step (~16 vregs of VPU work, hidden under the DMA), which
        # keeps it correct if the "parallel" row axis is sharded across TensorCores.
        i = jax.lax.broadcasted_iota(jnp.int32, (width, width), 0)
        j = jax.lax.broadcasted_iota(jnp.int32, (width, width), 1)
        seg_mask = ((i ^ j) < dim).astype(jnp.float32)

        x = x_ref[...].astype(jnp.float32)                      # (tm, 128)
        sq = x * x
        # HIGHEST keeps the segment sums f32-exact; mask is 0/1 so HIGH would also be
        # exact, but Mosaic's dot lowering only supports DEFAULT/HIGHEST.
        seg = jax.lax.dot(sq, seg_mask,
                          precision=jax.lax.Precision.HIGHEST,
                          preferred_element_type=jnp.float32)
        inv = jax.lax.rsqrt(jnp.maximum(seg, 1e-24))
        o_ref[...] = (x * inv * w_ref[...].astype(jnp.float32)).astype(o_ref.dtype)
    return kernel


# ----------------------------------------------------------------------------- sizing
_TINY_INPUT_BYTES = 256 * 1024   # below this much in+out HBM traffic, skip pallas_call


@functools.lru_cache(maxsize=None)
def _vmem_budgets():
    """(pipelined-buffer budget, compiler vmem_limit_bytes) for this TPU generation."""
    phys = None
    try:
        phys = int(pltpu.get_tpu_info().vmem_capacity_bytes)
    except Exception:
        phys = None
    if phys is None:
        try:
            kind = jax.devices()[0].device_kind.lower()
        except Exception:
            kind = ""
        phys = (64 << 20) if "v7" in kind else (128 << 20)
    if phys <= (64 << 20):          # v7x-class: 64 MiB physical VMEM per TensorCore
        return 16 << 20, 48 << 20
    return 24 << 20, 96 << 20       # v5e / v6e: 128 MiB physical VMEM


def _round_up(n, m):
    return -(-n // m) * m


def _pick_tm(rows, width, itemsize, budget_bytes):
    """Row tile sized by bytes: ~4 MiB of in+out HBM traffic per grid step, under the
    VMEM buffer budget (2x double-buffered in + 2x double-buffered out + ~2 f32
    temporaries per row), and >= 3 grid steps when the row count allows so the
    pipeline actually overlaps (and both v7x TensorCores get work)."""
    sub = {4: 8, 2: 16, 1: 32}.get(itemsize, 8)     # min sublane packing per dtype
    rows_up = _round_up(rows, sub)
    per_row_vmem = width * (4 * itemsize + 8)        # pipelined buffers + f32 temps
    tm_vmem = budget_bytes // max(per_row_vmem, 1)
    tm_hbm = (4 << 20) // max(width * itemsize * 2, 1)   # ~4 MiB in+out per step
    tm = min(tm_vmem, tm_hbm)
    if rows_up >= 3 * sub:                           # keep >= 3 steps for pipelining
        tm = min(tm, _round_up(-(-rows_up // 3), sub))
    tm = min(tm, rows_up)
    return int(max(sub, (tm // sub) * sub))


# ----------------------------------------------------------------------------- wrapper
@functools.partial(jax.jit, static_argnames=("tm", "min_pallas_bytes"))
def normalize_scale(x, weight, *, tm=None, min_pallas_bytes=_TINY_INPUT_BYTES):
    """x: (..., dim), weight: (1, dim). Returns F.normalize(x, p=2, dim=-1) * weight."""
    orig_shape = x.shape
    dim = orig_shape[-1]
    x2 = x.reshape(-1, dim)
    rows = x2.shape[0]
    itemsize = jnp.dtype(x.dtype).itemsize

    # Tiny inputs: a one-step pallas_call is dominated by fixed launch/pipeline
    # overhead; XLA fusion is as fast or faster for short text embeddings.
    if 2 * rows * dim * itemsize < min_pallas_bytes:
        xf = x2.astype(jnp.float32)
        inv = jax.lax.rsqrt(jnp.maximum(jnp.sum(xf * xf, -1, keepdims=True), 1e-24))
        wf = weight.reshape(1, dim).astype(jnp.float32)
        return (xf * inv * wf).astype(x.dtype).reshape(orig_shape)

    # Lane-fold g = 128//dim logical rows into the 128-lane axis when dim | 128,
    # zero-padding up to g-1 rows so row-count divisibility is no longer required.
    # TODO(synk): dims like 96/48 could fold to width lcm(dim,128)=384 with a wider
    # in-kernel mask; they currently take the (masked-store) fallback path.
    fold = dim < 128 and 128 % dim == 0
    rows_pad = rows
    if fold:
        g = 128 // dim
        width = 128
        rows_pad = _round_up(rows, g)
        if rows_pad != rows:
            x2 = jnp.pad(x2, ((0, rows_pad - rows), (0, 0)))
        xw = x2.reshape(rows_pad // g, width)          # free row-major reshape
        w_in = jnp.tile(weight.reshape(1, dim).astype(jnp.float32), (1, g))
        kernel = _make_folded_kernel(dim, width)
    else:
        width = dim
        xw = x2
        w_in = weight.reshape(1, dim).astype(jnp.float32)
        kernel = _normalize_scale_kernel

    rows_w = xw.shape[0]
    budget, vmem_limit = _vmem_budgets()
    if tm is None:
        tm = _pick_tm(rows_w, width, itemsize, budget)
    grid = pl.cdiv(rows_w, tm)      # no padding copy: ragged last block is masked,
                                    # and all math is strictly row-local.

    out = pl.pallas_call(
        kernel,
        out_shape=jax.ShapeDtypeStruct((rows_w, width), x.dtype),
        grid_spec=pltpu.PrefetchScalarGridSpec(
            num_scalar_prefetch=0,
            grid=(grid,),
            in_specs=[
                # sweep candidate (v6e): pipeline_mode=pl.Buffered(3) if xprof ever
                # shows exposed DMA at the chosen tm.
                pl.BlockSpec((tm, width), lambda i: (i, 0)),
                # weight stays resident in VMEM across all grid steps
                pl.BlockSpec(memory_space=pltpu.MemorySpace.VMEM),
            ],
            out_specs=pl.BlockSpec((tm, width), lambda i: (i, 0)),
        ),
        compiler_params=pltpu.CompilerParams(
            # row axis is embarrassingly parallel -> shards across v7x's 2 TCs
            dimension_semantics=("parallel",),
            vmem_limit_bytes=vmem_limit,
        ),
    )(xw, w_in)

    if fold:
        out = out.reshape(rows_pad, dim)[:rows]
    return out.reshape(orig_shape)


# ----------------------------------------------------------------------------- reference
def normalize_scale_ref(x, weight):
    # Pure-JAX reference replicating PyTorch F.normalize(p=2, dim=-1) * weight
    norm = jnp.sqrt(jnp.sum(x.astype(jnp.float32) ** 2, axis=-1, keepdims=True))
    xn = x / jnp.maximum(norm, 1e-12)
    return (xn * weight).astype(x.dtype)


if __name__ == "__main__":
    key = jax.random.PRNGKey(0)
    k1, k2, k3 = jax.random.split(key, 3)
    init_norm = 20.0

    # Case 1: small embedding dim (< 128) with a row count that is NOT a multiple of
    # g = 128//dim -> exercises the lane-folded kernel + the new row padding.
    batch, seq, dim = 2, 15, 32
    x1 = jax.random.normal(k1, (batch, seq, dim), dtype=jnp.float32)
    w1 = jnp.ones((1, dim), dtype=jnp.float32) * init_norm
    out1 = normalize_scale(x1, w1, min_pallas_bytes=0)     # force the Pallas path
    jax.block_until_ready(out1)
    ref1 = normalize_scale_ref(x1, w1)
    assert out1.shape == x1.shape and out1.dtype == x1.dtype
    assert jnp.allclose(out1, ref1, atol=1e-4, rtol=1e-4)

    # Case 2: dim >= 128, ragged row count, forced small tile -> multi-step grid.
    rows2, dim2 = 300, 256
    x2 = jax.random.normal(k2, (rows2, dim2), dtype=jnp.float32)
    w2 = jnp.ones((1, dim2), dtype=jnp.float32) * init_norm
    out2 = normalize_scale(x2, w2, tm=64, min_pallas_bytes=0)
    jax.block_until_ready(out2)
    ref2 = normalize_scale_ref(x2, w2)
    assert out2.shape == x2.shape and out2.dtype == x2.dtype
    assert jnp.allclose(out2, ref2, atol=1e-4, rtol=1e-4)

    # Case 3: default auto path (bytes-based tile sizing, >= 3 grid steps).
    x3 = jax.random.normal(k3, (2, 305, 256), dtype=jnp.float32)
    w3 = jnp.ones((1, 256), dtype=jnp.float32) * init_norm
    out3 = normalize_scale(x3, w3)
    jax.block_until_ready(out3)
    ref3 = normalize_scale_ref(x3, w3)
    assert out3.shape == x3.shape and out3.dtype == x3.dtype
    assert jnp.allclose(out3, ref3, atol=1e-4, rtol=1e-4)

    print("KERNEL_OK")
</pallas_src>

<mosaic_0001>
module attributes {stable_mosaic.version = 11 : i64} {
  func.func @kernel(%arg0: i32, %arg1: memref<8x128xf32, #tpu.memory_space<vmem>>, %arg2: memref<1x128xf32, #tpu.memory_space<vmem>>, %arg3: memref<8x128xf32, #tpu.memory_space<vmem>>) attributes {dimension_semantics = [#tpu.dimension_semantics<parallel>], iteration_bounds = array<i64: 1>, scalar_prefetch = 0 : i64, scratch_operands = 0 : i64, tpu.core_type = #tpu.core_type<tc>, window_params = [{transform_indices = @transform_0, window_bounds = array<i64: 8, 128>}, {pipeline_mode = #tpu.pipeline_mode<synchronous>, transform_indices = @transform_1, window_bounds = array<i64: 1, 128>}, {transform_indices = @transform_2, window_bounds = array<i64: 8, 128>}]} {
    %0 = tpu.iota {dimensions = array<i32: 0>} : vector<128x128xi32>
    %1 = tpu.iota {dimensions = array<i32: 1>} : vector<128x128xi32>
    %2 = arith.xori %0, %1 : vector<128x128xi32>
    %c32_i32 = arith.constant 32 : i32
    %3 = vector.broadcast %c32_i32 : i32 to vector<128x128xi32>
    %4 = arith.cmpi slt, %2, %3 : vector<128x128xi32>
    %5 = arith.extui %4 : vector<128x128xi1> to vector<128x128xi32>
    %6 = arith.sitofp %5 : vector<128x128xi32> to vector<128x128xf32>
    %c0 = arith.constant 0 : index
    %c0_0 = arith.constant 0 : index
    %7 = vector.load %arg1[%c0, %c0_0] : memref<8x128xf32, #tpu.memory_space<vmem>>, vector<8x128xf32>
    %8 = arith.mulf %7, %7 : vector<8x128xf32>
    %cst = arith.constant dense<0.000000e+00> : vector<8x128xf32>
    %9 = tpu.matmul %8, %6, %cst {dimension_numbers = #tpu.dot_dimension_numbers<[1], [0], [0], [1], [0, 0, 1, 1], [], []>, precision = #tpu.contract_precision<fp32>} : vector<8x128xf32>, vector<128x128xf32>, vector<8x128xf32> -> vector<8x128xf32>
    %cst_1 = arith.constant 1.000000e-24 : f32
    %10 = vector.broadcast %cst_1 : f32 to vector<8x128xf32>
    %11 = arith.maximumf %9, %10 : vector<8x128xf32>
    %12 = math.rsqrt %11 : vector<8x128xf32>
    %13 = arith.mulf %7, %12 : vector<8x128xf32>
    %c0_2 = arith.constant 0 : index
    %c0_3 = arith.constant 0 : index
    %14 = vector.load %arg2[%c0_2, %c0_3] : memref<1x128xf32, #tpu.memory_space<vmem>>, vector<1x128xf32>
    %15 = vector.broadcast %14 : vector<1x128xf32> to vector<8x128xf32>
    %16 = arith.mulf %13, %15 : vector<8x128xf32>
    %c0_4 = arith.constant 0 : index
    %c0_5 = arith.constant 0 : index
    %17 = vector.load %arg3[%c0_4, %c0_5] : memref<8x128xf32, #tpu.memory_space<vmem>>, vector<8x128xf32>
    tpu.vector_store %arg3[%c0_4, %c0_5], %16 {strides = array<i32>} : memref<8x128xf32, #tpu.memory_space<vmem>>, vector<8x128xf32>,
    return
  }
  func.func @transform_0(%arg0: i32) -> (i32, i32) {
    %c0_i32 = arith.constant 0 : i32
    %c0_i32_0 = arith.constant 0 : i32
    return %arg0, %c0_i32 : i32, i32
  }
  func.func @transform_1(%arg0: i32) -> (i32, i32) {
    %c0_i32 = arith.constant 0 : i32
    %c0_i32_0 = arith.constant 0 : i32
    %c0_i32_1 = arith.constant 0 : i32
    return %c0_i32, %c0_i32_0 : i32, i32
  }
  func.func @transform_2(%arg0: i32) -> (i32, i32) {
    %c0_i32 = arith.constant 0 : i32
    %c0_i32_0 = arith.constant 0 : i32
    return %arg0, %c0_i32 : i32, i32
  }
}

</mosaic_0001>

<bundles_post_ra>
// kernel: normalize_scale.1
= control target key start
LH: loop header
LB: loop body
LE: loop exit
PB: predicated region body
PF: predicated region fallthrough
CT: control target
= control target key end

     0   :  { %7 = vsyncpa [#allocation3], 0  ;;  %s1903_s0 = inlined_call_operand.hbm [shape: f32[8,128], index: 0, kind: input, shape index: {}]   ;;  %s1904_s1 = inlined_call_operand.hbm [shape: f32[1,128], index: 1, kind: input, shape index: {}]   ;;  %s1905_s2 = inlined_call_operand.hbm [shape: f32[8,128], index: 2, kind: output, shape index: {}]  }
   0x1   :  { %8 = vsyncpa [#allocation6], 0 }
   0x2   :  { %9 = vsyncpa [#allocation4], 0  ;;  %s1401_s9 = smov [#allocation2]   ;;  %s1402_s11 = smov [#allocation5]  }
   0x3   :  { %s16_s10 = sshll.u32 %s1401_s9, 4  ;;  %s26_s12 = sshll.u32 %s1402_s11, 4  ;;  %s17_s10 = int_to_ptr.vmem [resolvable:$true] %s16_s10  ;;  %s27_s12 = int_to_ptr.vmem [resolvable:$true] %s26_s12 }
   0x4   :  { %s1329_s15 = scalar_lea.hbm %s1903_s0, 128 }
   0x5   :  { %p1330_p0 = scmp.ne.s32.totalorder %s1903_s0, %s1329_s15  ;;  %p1333_p1 = scmp.lt.u32.totalorder %s1329_s15, %s1903_s0 }
   0x7   :  { %p1335_p2 = pnand %p1333_p1, %p1330_p0 }
   0x9   :  { %1338 = shalt.err (!%p1335_p2)
}
   0xa   :  { %s1339_s20 = scalar_lea.vmem %s17_s10, 128  ;;  %p1344_p4 = scmp.lt.s32.totalorder %s17_s10, %s17_s10 }
   0xb   :  { %p1340_p3 = scmp.ne.s32.totalorder %s17_s10, %s1339_s20  ;;  %p1345_p5 = scmp.lt.s32.totalorder %s1339_s20, %s1339_s20 }
   0xd   :  { %p1346_p6 = por %p1345_p5, %p1344_p4 }
   0xf   :  { %p1347_p7 = pnand %p1346_p6, %p1340_p3 }
  0x11   :  { %1350 = shalt.err (!%p1347_p7)
}
  0x12   :  { %19 = dma.hbm_to_vmem [thread:$0]  %s1903_s0, 128, %s17_s10, [#allocation3]  }
  0x13   :  { %s1351_s25 = scalar_lea.hbm %s1904_s1, 16 }
  0x14   :  { %p1352_p8 = scmp.ne.s32.totalorder %s1904_s1, %s1351_s25  ;;  %p1355_p9 = scmp.lt.u32.totalorder %s1351_s25, %s1904_s1 }
  0x16   :  { %p1357_p10 = pnand %p1355_p9, %p1352_p8 }
  0x18   :  { %1360 = shalt.err (!%p1357_p10)
}
  0x19   :  { %s1361_s30 = scalar_lea.vmem %s27_s12, 16  ;;  %s1365_s3 = scalar_lea.vmem %s27_s12, 32 }
  0x1a   :  { %p1362_p11 = scmp.ne.s32.totalorder %s27_s12, %s1361_s30  ;;  %p1366_p12 = scmp.lt.s32.totalorder %s27_s12, %s27_s12 }
  0x1b   :  { %p1367_p13 = scmp.lt.s32.totalorder %s1365_s3, %s1361_s30 }
  0x1d   :  { %p1368_p0 = por %p1367_p13, %p1366_p12 }
  0x1f   :  { %p1369_p1 = pnand %p1368_p0, %p1362_p11 }
  0x21   :  { %1372 = shalt.err (!%p1369_p1)
}
  0x22   :  { %29 = dma.hbm_to_vmem [thread:$0]  %s1904_s1, 16, %s27_s12, [#allocation6]  }
  0x23   :  { %1395 = dma.done.wait [#allocation3], 128  }
  0x24   :  { %1396 = vsyncadd [#allocation3], 4294967168  ;;  %v36_v0 = vlaneseq }
  0x25   :  { %1397 = dma.done.wait [#allocation6], 16  }
  0x26   :  { %1398 = vsyncadd [#allocation6], 4294967280  ;;  %v1403_v1 = vmov 0.0|0.0   ;;  %v1449_v2 = vshrl.u32 %v36_v0, 7  ;;  %v1451_v3 = vand.u32 127, %v36_v0  ;;  %vm1404_vm0 = vmmov 0  }
  0x27   :  { %1167 = vmatprep.subr.bf16.mxu1 %v1403_v1  ;;  %1239 = vmatprep.subr.bf16.mxu0 %v1403_v1  ;;  %v1405_v4 = vmov 0.0   ;;  %v1406_v23 = vmov 1.0|1.0   ;;  %v1614_v55 = vld [vmem:[#allocation2] sm:$0xff]  ;;  %s1407_s1 = smov [#allocation7]  }
  0x28   :  { %989 = vmatprep.mubr.msk.f32.mxu1 %vm1404_vm0, %v1405_v4  ;;  %1094 = vmatprep.mubr.msk.f32.mxu0 %vm1404_vm0, %v1405_v4  ;;  %v38_v5 = vadd.s32 8, %v1449_v2  ;;  %v55_v6 = vxor.u32 %v1451_v3, %v1449_v2  ;;  %v39_v7 = vadd.s32 16, %v1449_v2  ;;  %v40_v8 = vadd.s32 24, %v1449_v2  ;;  %s780_s5 = sshll.u32 %s1407_s1, 4  ;;  %s781_s5 = int_to_ptr.vmem [resolvable:$true] %s780_s5 }
  0x29   :  { %v41_v9 = vadd.s32 32, %v1449_v2  ;;  %v42_v10 = vadd.s32 40, %v1449_v2  ;;  %v43_v16 = vadd.s32 48, %v1449_v2  ;;  %v44_v17 = vadd.s32 56, %v1449_v2  ;;  %s1373_s6 = scalar_lea.vmem %s781_s5, 128  ;;  %p1378_p3 = scmp.lt.s32.totalorder %s781_s5, %s781_s5 }
  0x2a   :  { %v56_v11 = vxor.u32 %v1451_v3, %v38_v5  ;;  %vm1465_vm1 = vcmp.lt.s32.totalorder %v55_v6, 32  ;;  %v57_v13 = vxor.u32 %v1451_v3, %v39_v7  ;;  %v58_v14 = vxor.u32 %v1451_v3, %v40_v8  ;;  %p1374_p2 = scmp.ne.s32.totalorder %s781_s5, %s1373_s6  ;;  %p1379_p4 = scmp.lt.s32.totalorder %s1373_s6, %s1373_s6 }
  0x2b   :  { %v59_v15 = vxor.u32 %v1451_v3, %v41_v9  ;;  %v60_v21 = vxor.u32 %v1451_v3, %v42_v10  ;;  %v61_v27 = vxor.u32 %v1451_v3, %v43_v16  ;;  %v62_v28 = vxor.u32 %v1451_v3, %v44_v17 }
  0x2c   :  { %vm1474_vm2 = vcmp.lt.s32.totalorder %v56_v11, 32  ;;  %vm1478_vm3 = vcmp.lt.s32.totalorder %v57_v13, 32  ;;  %vm1482_vm4 = vcmp.lt.s32.totalorder %v58_v14, 32  ;;  %v790_v29 = vsel %vm1465_vm1, 1.0, %v1405_v4  ;;  %p1380_p5 = por %p1379_p4, %p1378_p3 }
  0x2d   :  { %vm1491_vm5 = vmpackc.low %vm1474_vm2, %vm1465_vm1  ;;  %vm1511_vm7 = vcmp.lt.s32.totalorder %v59_v15, 32  ;;  %vm1515_vm8 = vcmp.lt.s32.totalorder %v60_v21, 32  ;;  %v45_v31 = vadd.s32 64, %v1449_v2  ;;  %vm1541_vm10 = vcmp.lt.s32.totalorder %v61_v27, 32 }
  0x2e   :  { %1169 = vmatpush3.bf16.msk.msra.mxu1 %vm1491_vm5, %v1406_v23  ;;  %1241 = vmatpush3.bf16.msk.msra.mxu0 %vm1491_vm5, %v1406_v23  ;;  %vm1507_vm6 = vmpackc.low %vm1482_vm4, %vm1478_vm3  ;;  %vm1545_vm11 = vcmp.lt.s32.totalorder %v62_v28, 32  ;;  %v46_v34 = vadd.s32 72, %v1449_v2  ;;  %v47_v35 = vadd.s32 80, %v1449_v2  ;;  %v48_v37 = vadd.s32 88, %v1449_v2  ;;  %p1381_p6 = pnand %p1380_p5, %p1374_p2 }
  0x2f   :  { %1170 = vmatprep.subr.bf16.mxu1 %v1403_v1  ;;  %1242 = vmatprep.subr.bf16.mxu0 %v1403_v1  ;;  %vm1536_vm9 = vmpackc.low %vm1515_vm8, %vm1511_vm7  ;;  %v63_v36 = vxor.u32 %v1451_v3, %v45_v31  ;;  %v791_v38 = vsel %vm1474_vm2, 1.0, %v1405_v4  ;;  %v1563_v40 = vsub.f32 %v790_v29, %v790_v29  ;;  %v49_v43 = vadd.s32 96, %v1449_v2 }
  0x30   :  { %v64_v39 = vxor.u32 %v1451_v3, %v46_v34  ;;  %vm1571_vm12 = vmpackc.low %vm1545_vm11, %vm1541_vm10  ;;  %v65_v42 = vxor.u32 %v1451_v3, %v47_v35  ;;  %v66_v46 = vxor.u32 %v1451_v3, %v48_v37  ;;  %v50_v47 = vadd.s32 104, %v1449_v2 }
  0x31   :  { %vm1577_vm13 = vcmp.lt.s32.totalorder %v63_v36, 32  ;;  %v1587_v48 = vsub.f32 %v791_v38, %v791_v38  ;;  %v792_v49 = vsel %vm1478_vm3, 1.0, %v1405_v4  ;;  %v215_v50 = vand.u32 4294901760, %v1563_v40 }
  0x32   :  { %1172 = vmatpush3.bf16.msk.msra.mxu1 %vm1507_vm6, %v1406_v23  ;;  %1244 = vmatpush3.bf16.msk.msra.mxu0 %vm1507_vm6, %v1406_v23  ;;  %vm1581_vm14 = vcmp.lt.s32.totalorder %v64_v39, 32  ;;  %v793_v51 = vsel %vm1482_vm4, 1.0, %v1405_v4  ;;  %v67_v53 = vxor.u32 %v1451_v3, %v49_v43  ;;  %v51_v54 = vadd.s32 112, %v1449_v2 }
  0x33   :  { %1173 = vmatprep.subr.bf16.mxu1 %v1403_v1  ;;  %1245 = vmatprep.subr.bf16.mxu0 %v1403_v1  ;;  %vm1608_vm15 = vmpackc.low %vm1581_vm14, %vm1577_vm13  ;;  %vm1616_vm1 = vcmp.lt.s32.totalorder %v65_v42, 32  ;;  %vm1620_vm2 = vcmp.lt.s32.totalorder %v66_v46, 32  ;;  %v68_v58 = vxor.u32 %v1451_v3, %v50_v47  ;;  %v52_v59 = vadd.s32 120, %v1449_v2 }
  0x34   :  { %v222_v60 = vand.u32 4294901760, %v1587_v48  ;;  %v1627_v61 = vsub.f32 %v792_v49, %v792_v49  ;;  %v1629_v62 = vsub.f32 %v793_v51, %v793_v51  ;;  %v794_v63 = vsel %vm1511_vm7, 1.0, %v1405_v4  ;;  %vm1657_vm3 = vmpackc.low %vm1620_vm2, %vm1616_vm1 }
  0x35   :  { %v120_v0 = vmul.f32 %v1614_v55, %v1614_v55  ;;  %v216_v2 = vsub.f32 %v1563_v40, %v215_v50  ;;  %v795_v5 = vsel %vm1515_vm8, 1.0, %v1405_v4  ;;  %v796_v6 = vsel %vm1541_vm10, 1.0, %v1405_v4 }
  0x36   :  { %1175 = vmatpush3.bf16.msk.msra.mxu1 %vm1536_vm9, %v1406_v23  ;;  %1247 = vmatpush3.bf16.msk.msra.mxu0 %vm1536_vm9, %v1406_v23  ;;  %vm1661_vm4 = vcmp.lt.s32.totalorder %v67_v53, 32  ;;  %vm1665_vm7 = vcmp.lt.s32.totalorder %v68_v58, 32  ;;  %v69_v10 = vxor.u32 %v1451_v3, %v51_v54  ;;  %v70_v11 = vxor.u32 %v1451_v3, %v52_v59 }
  0x37   :  { %1176 = vmatprep.subr.bf16.mxu1 %v1403_v1  ;;  %1248 = vmatprep.subr.bf16.mxu0 %v1403_v1  ;;  %v1671_v12 = vand.u32 4294901760, %v120_v0  ;;  %v223_v13 = vsub.f32 %v1587_v48, %v222_v60  ;;  %v1674_v14 = vsub.f32 %v794_v63, %v794_v63  ;;  %v797_v15 = vsel %vm1545_vm11, 1.0, %v1405_v4  ;;  %vm1700_vm8 = vmpackc.low %vm1665_vm7, %vm1661_vm4 }
  0x38   :  { %v229_v16 = vand.u32 4294901760, %v1627_v61  ;;  %v236_v17 = vand.u32 4294901760, %v1629_v62  ;;  %v1681_v18 = vsub.f32 %v795_v5, %v795_v5  ;;  %v217_v19 = vand.u32 4294901760, %v216_v2 }
  0x39   :  { %v1690_v3 = vsub.f32 %v120_v0, %v1671_v12  ;;  %v1692_v20 = vsub.f32 %v796_v6, %v796_v6  ;;  %v1704_v25 = vsub.f32 %v797_v15, %v797_v15  ;;  %vm1706_vm10 = vcmp.lt.s32.totalorder %v69_v10, 32 }
  0x3a   :  { %1178 = vmatpush3.bf16.msk.msra.mxu1 %vm1571_vm12, %v1406_v23  ;;  %1250 = vmatpush3.bf16.msk.msra.mxu0 %vm1571_vm12, %v1406_v23  ;;  %vm1710_vm11 = vcmp.lt.s32.totalorder %v70_v11, 32  ;;  %v224_v29 = vand.u32 4294901760, %v223_v13  ;;  %v243_v31 = vand.u32 4294901760, %v1674_v14  ;;  %v798_v32 = vsel %vm1577_vm13, 1.0, %v1405_v4 }
  0x3b   :  { %1179 = vmatprep.subr.bf16.mxu1 %v1403_v1  ;;  %1251 = vmatprep.subr.bf16.mxu0 %v1403_v1  ;;  %v204_v28 = vand.u32 4294901760, %v1690_v3  ;;  %v799_v33 = vsel %vm1581_vm14, 1.0, %v1405_v4  ;;  %v250_v34 = vand.u32 4294901760, %v1681_v18  ;;  %v230_v36 = vsub.f32 %v1627_v61, %v229_v16  ;;  %vm1739_vm13 = vmpackc.low %vm1710_vm11, %vm1706_vm10 }
  0x3c   :  { %v237_v37 = vsub.f32 %v1629_v62, %v236_v17  ;;  %v257_v38 = vand.u32 4294901760, %v1692_v20  ;;  %v264_v42 = vand.u32 4294901760, %v1704_v25  ;;  %v1744_v43 = vsub.f32 %v798_v32, %v798_v32 }
  0x3d   :  { %v205_v35 = vsub.f32 %v1690_v3, %v204_v28  ;;  %v1746_v44 = vsub.f32 %v799_v33, %v799_v33  ;;  %v800_v45 = vsel %vm1616_vm1, 1.0, %v1405_v4  ;;  %v801_v46 = vsel %vm1620_vm2, 1.0, %v1405_v4 }
  0x3e   :  { %1181 = vmatpush3.bf16.msk.msra.mxu1 %vm1608_vm15, %v1406_v23  ;;  %1253 = vmatpush3.bf16.msk.msra.mxu0 %vm1608_vm15, %v1406_v23  ;;  %v1192_v49 = vpack.c.bf16 %v224_v29, %v217_v19  ;;  %v244_v51 = vsub.f32 %v1674_v14, %v243_v31  ;;  %v1264_v53 = vpack.c.bf16 %v222_v60, %v215_v50  ;;  %v231_v54 = vand.u32 4294901760, %v230_v36 }
  0x3f   :  { %1182 = vmatprep.subr.bf16.mxu1 %v1403_v1  ;;  %1254 = vmatprep.subr.bf16.mxu0 %v1403_v1  ;;  %v206_v47 = vand.u32 4294901760, %v205_v35  ;;  %v238_v56 = vand.u32 4294901760, %v237_v37  ;;  %v251_v57 = vsub.f32 %v1681_v18, %v250_v34  ;;  %v271_v58 = vand.u32 4294901760, %v1744_v43 }
  0x40   :  { %v278_v59 = vand.u32 4294901760, %v1746_v44  ;;  %v1768_v63 = vsub.f32 %v800_v45, %v800_v45  ;;  %v1770_v0 = vsub.f32 %v801_v46, %v801_v46  ;;  %v802_v50 = vsel %vm1661_vm4, 1.0, %v1405_v4 }
  0x41   :  { %v803_v60 = vsel %vm1665_vm7, 1.0, %v1405_v4  ;;  %v1267_v2 = vpack.c.bf16 %v236_v17, %v229_v16  ;;  %v245_v5 = vand.u32 4294901760, %v244_v51  ;;  %v1195_v6 = vpack.c.bf16 %v238_v56, %v231_v54 }
  0x42   :  { %1184 = vmatpush3.bf16.msk.msra.mxu1 %vm1657_vm3, %v1406_v23  ;;  %1256 = vmatpush3.bf16.msk.msra.mxu0 %vm1657_vm3, %v1406_v23  ;;  %v252_v10 = vand.u32 4294901760, %v251_v57  ;;  %v258_v11 = vsub.f32 %v1692_v20, %v257_v38  ;;  %v265_v13 = vsub.f32 %v1704_v25, %v264_v42  ;;  %v285_v8 = vand.u32 4294901760, %v1768_v63 }
  0x43   :  { %1185 = vmatprep.subr.bf16.mxu1 %v1403_v1  ;;  %1257 = vmatprep.subr.bf16.mxu0 %v1403_v1  ;;  %v292_v9 = vand.u32 4294901760, %v1770_v0  ;;  %v1784_v15 = vsub.f32 %v802_v50, %v802_v50  ;;  %v1786_v16 = vsub.f32 %v803_v60, %v803_v60  ;;  %v804_v17 = vsel %vm1706_vm10, 1.0, %v1405_v4 }
  0x44   :  { %v805_v19 = vsel %vm1710_vm11, 1.0, %v1405_v4  ;;  %v272_v29 = vsub.f32 %v1744_v43, %v271_v58  ;;  %v1198_v32 = vpack.c.bf16 %v252_v10, %v245_v5  ;;  %v259_v33 = vand.u32 4294901760, %v258_v11 }
  0x45   :  { %v266_v35 = vand.u32 4294901760, %v265_v13  ;;  %v279_v36 = vsub.f32 %v1746_v44, %v278_v59  ;;  %v299_v26 = vand.u32 4294901760, %v1784_v15  ;;  %v306_v37 = vand.u32 4294901760, %v1786_v16 }
  0x46   :  { %1187 = vmatpush3.bf16.msk.msra.mxu1 %vm1700_vm8, %v1406_v23  ;;  %1259 = vmatpush3.bf16.msk.msra.mxu0 %vm1700_vm8, %v1406_v23  ;;  %v1804_v27 = vsub.f32 %v804_v17, %v804_v17  ;;  %v286_v45 = vsub.f32 %v1768_v63, %v285_v8  ;;  %v293_v51 = vsub.f32 %v1770_v0, %v292_v9 }
  0x47   :  { %1188 = vmatprep.subr.bf16.mxu1 %v1403_v1  ;;  %1260 = vmatprep.subr.bf16.mxu0 %v1403_v1  ;;  %v1201_v46 = vpack.c.bf16 %v266_v35, %v259_v33  ;;  %v1276_v56 = vpack.c.bf16 %v278_v59, %v271_v58  ;;  %v300_v50 = vsub.f32 %v1784_v15, %v299_v26 }
  0x48   :  { %v287_v57 = vand.u32 4294901760, %v286_v45  ;;  %v307_v60 = vsub.f32 %v1786_v16, %v306_v37  ;;  %v1282_v13 = vpack.c.bf16 %v306_v37, %v299_v26  ;;  %v1222_v22 = vpack.c.bf16 %v1681_v18, %v1674_v14 }
  0x49   :  { %v301_v58 = vand.u32 4294901760, %v300_v50  ;;  %v1228_v24 = vpack.c.bf16 %v1746_v44, %v1744_v43  ;;  %v1231_v30 = vpack.c.bf16 %v1770_v0, %v1768_v63 }
  0x4a   :  { %1190 = vmatpush3.bf16.msk.msra.mxu1 %vm1739_vm13, %v1406_v23  ;;  %1262 = vmatpush3.bf16.msk.msra.mxu0 %vm1739_vm13, %v1406_v23  ;;  %v308_v59 = vand.u32 4294901760, %v307_v60 }
  0x4b   :  { %1191 = vmatprep.subr.bf16.mxu1 %v1403_v1  ;;  %1263 = vmatprep.subr.bf16.mxu0 %v1403_v1 }
  0x4c   :  { %v1210_v11 = vpack.c.bf16 %v308_v59, %v301_v58 }
  0x4d   :  { %990 = vmatmul.mubr.f32.vlgmr.msra.gmra.mrb[0].mxu1 %v206_v47  ;;  %1095 = vmatmul.mubr.f32.vlgmr.msra.gmra.mrb[0].mxu0 %v204_v28  ;;  %v1270_v28 = vpack.c.bf16 %v250_v34, %v243_v31  ;;  %v1806_v31 = vsub.f32 %v805_v19, %v805_v19  ;;  %v1273_v34 = vpack.c.bf16 %v264_v42, %v257_v38  ;;  %v273_v47 = vand.u32 4294901760, %v272_v29 }
  0x4e   :  { %1193 = vmatpush3.bf16.msra.mxu1 %v1192_v49  ;;  %1265 = vmatpush3.bf16.msra.mxu0 %v1264_v53  ;;  %v280_v49 = vand.u32 4294901760, %v279_v36  ;;  %v313_v53 = vand.u32 4294901760, %v1804_v27  ;;  %v294_v42 = vand.u32 4294901760, %v293_v51  ;;  %v1219_v29 = vpack.c.bf16 %v1629_v62, %v1627_v61 }
  0x4f   :  { %1194 = vmatprep.subr.bf16.mxu1 %v1403_v1  ;;  %1266 = vmatprep.subr.bf16.mxu0 %v1403_v1  ;;  %v320_v54 = vand.u32 4294901760, %v1806_v31  ;;  %v1237_v41 = vpack.c.bf16 %v1806_v31, %v1804_v27 }
  0x50   :  { %1024 = vmatprep.mubr.msk.f32.mxu1 %vm1404_vm0, %v1405_v4  ;;  %1129 = vmatprep.mubr.msk.f32.mxu0 %vm1404_vm0, %v1405_v4  ;;  %v1204_v38 = vpack.c.bf16 %v280_v49, %v273_v47  ;;  %v314_v5 = vsub.f32 %v1804_v27, %v313_v53 }
  0x51   :  { %v321_v10 = vsub.f32 %v1806_v31, %v320_v54 }
  0x52   :  { %1196 = vmatpush3.bf16.msra.mxu1 %v1195_v6  ;;  %1268 = vmatpush3.bf16.msra.mxu0 %v1267_v2  ;;  %v1279_v2 = vpack.c.bf16 %v292_v9, %v285_v8  ;;  %v1207_v6 = vpack.c.bf16 %v294_v42, %v287_v57  ;;  %v315_v17 = vand.u32 4294901760, %v314_v5  ;;  %v1285_v9 = vpack.c.bf16 %v320_v54, %v313_v53 }
  0x53   :  { %1197 = vmatprep.subr.bf16.mxu1 %v1403_v1  ;;  %1269 = vmatprep.subr.bf16.mxu0 %v1403_v1  ;;  %v322_v19 = vand.u32 4294901760, %v321_v10 }
  0x55   :  { %v1213_v8 = vpack.c.bf16 %v322_v19, %v315_v17 }
  0x56   :  { %1199 = vmatpush3.bf16.msra.mxu1 %v1198_v32  ;;  %1271 = vmatpush3.bf16.msra.mxu0 %v1270_v28  ;;  %v1216_v28 = vpack.c.bf16 %v1587_v48, %v1563_v40  ;;  %v1234_v40 = vpack.c.bf16 %v1786_v16, %v1784_v15 }
  0x57   :  { %1200 = vmatprep.subr.bf16.mxu1 %v1403_v1  ;;  %1272 = vmatprep.subr.bf16.mxu0 %v1403_v1 }
  0x5a   :  { %1202 = vmatpush3.bf16.msra.mxu1 %v1201_v46  ;;  %1274 = vmatpush3.bf16.msra.mxu0 %v1273_v34 }
  0x5b   :  { %1203 = vmatprep.subr.bf16.mxu1 %v1403_v1  ;;  %1275 = vmatprep.subr.bf16.mxu0 %v1403_v1 }
  0x5e   :  { %1205 = vmatpush3.bf16.msra.mxu1 %v1204_v38  ;;  %1277 = vmatpush3.bf16.msra.mxu0 %v1276_v56 }
  0x5f   :  { %1206 = vmatprep.subr.bf16.mxu1 %v1403_v1  ;;  %1278 = vmatprep.subr.bf16.mxu0 %v1403_v1 }
  0x62   :  { %1208 = vmatpush3.bf16.msra.mxu1 %v1207_v6  ;;  %1280 = vmatpush3.bf16.msra.mxu0 %v1279_v2 }
  0x63   :  { %1209 = vmatprep.subr.bf16.mxu1 %v1403_v1  ;;  %1281 = vmatprep.subr.bf16.mxu0 %v1403_v1 }
  0x66   :  { %1211 = vmatpush3.bf16.msra.mxu1 %v1210_v11  ;;  %1283 = vmatpush3.bf16.msra.mxu0 %v1282_v13 }
  0x67   :  { %1212 = vmatprep.subr.bf16.mxu1 %v1403_v1  ;;  %1284 = vmatprep.subr.bf16.mxu0 %v1403_v1 }
  0x6a   :  { %1214 = vmatpush3.bf16.msra.mxu1 %v1213_v8  ;;  %1286 = vmatpush3.bf16.msra.mxu0 %v1285_v9 }
  0x6b   :  { %1215 = vmatprep.subr.bf16.mxu1 %v1403_v1  ;;  %1287 = vmatprep.subr.bf16.mxu0 %v1403_v1 }
  0x6d   :  { %1025 = vmatmul.mubr.f32.vlgmr.msra.gmra.mrb[0].mxu1 %v1671_v12  ;;  %1130 = vmatmul.mubr.f32.vlgmr.msra.gmra.mrb[0].mxu0 %v1671_v12 }
  0x6e   :  { %1217 = vmatpush3.bf16.msra.mxu1 %v1216_v28  ;;  %1289 = vmatpush3.bf16.msk.msra.mxu0 %vm1491_vm5, %v1406_v23 }
  0x6f   :  { %1218 = vmatprep.subr.bf16.mxu1 %v1403_v1  ;;  %1290 = vmatprep.subr.bf16.mxu0 %v1403_v1 }
  0x70   :  { %1059 = vmatprep.mubr.msk.f32.mxu1 %vm1404_vm0, %v1405_v4  ;;  %1164 = vmatprep.mubr.msk.f32.mxu0 %vm1404_vm0, %v1405_v4  ;;  %v1225_v4 = vpack.c.bf16 %v1704_v25, %v1692_v20  ;;  %v854_v20 = vld [vmem:[#allocation5] ss:$0 sm:$0xff] }
  0x72   :  { %1220 = vmatpush3.bf16.msra.mxu1 %v1219_v29  ;;  %1292 = vmatpush3.bf16.msk.msra.mxu0 %vm1507_vm6, %v1406_v23 }
  0x73   :  { %1221 = vmatprep.subr.bf16.mxu1 %v1403_v1  ;;  %1293 = vmatprep.subr.bf16.mxu0 %v1403_v1 }
  0x76   :  { %1223 = vmatpush3.bf16.msra.mxu1 %v1222_v22  ;;  %1295 = vmatpush3.bf16.msk.msra.mxu0 %vm1536_vm9, %v1406_v23 }
  0x77   :  { %1224 = vmatprep.subr.bf16.mxu1 %v1403_v1  ;;  %1296 = vmatprep.subr.bf16.mxu0 %v1403_v1 }
  0x7a   :  { %1226 = vmatpush3.bf16.msra.mxu1 %v1225_v4  ;;  %1298 = vmatpush3.bf16.msk.msra.mxu0 %vm1571_vm12, %v1406_v23 }
  0x7b   :  { %1227 = vmatprep.subr.bf16.mxu1 %v1403_v1  ;;  %1299 = vmatprep.subr.bf16.mxu0 %v1403_v1 }
  0x7e   :  { %1229 = vmatpush3.bf16.msra.mxu1 %v1228_v24  ;;  %1301 = vmatpush3.bf16.msk.msra.mxu0 %vm1608_vm15, %v1406_v23 }
  0x7f   :  { %1230 = vmatprep.subr.bf16.mxu1 %v1403_v1  ;;  %1302 = vmatprep.subr.bf16.mxu0 %v1403_v1 }
  0x82   :  { %1232 = vmatpush3.bf16.msra.mxu1 %v1231_v30  ;;  %1304 = vmatpush3.bf16.msk.msra.mxu0 %vm1657_vm3, %v1406_v23 }
  0x83   :  { %1233 = vmatprep.subr.bf16.mxu1 %v1403_v1  ;;  %1305 = vmatprep.subr.bf16.mxu0 %v1403_v1 }
  0x86   :  { %1235 = vmatpush3.bf16.msra.mxu1 %v1234_v40  ;;  %1307 = vmatpush3.bf16.msk.msra.mxu0 %vm1700_vm8, %v1406_v23 }
  0x87   :  { %1236 = vmatprep.subr.bf16.mxu1 %v1403_v1  ;;  %1308 = vmatprep.subr.bf16.mxu0 %v1403_v1 }
  0x8a   :  { %1238 = vmatpush3.bf16.msra.mxu1 %v1237_v41  ;;  %1310 = vmatpush3.bf16.msk.msra.mxu0 %vm1739_vm13, %v1406_v23 }
  0x8d   :  { %1060 = vmatmul.mubr.f32.vlgmr.msra.gmra.mrb[0].mxu1 %v1690_v3  ;;  %1165 = vmatmul.mubr.f32.vlgmr.msra.gmra.mrb[0].mxu0 %v1671_v12 }
 0x160   :  { %v463_v48 = vpop.f32.mrb[0].mxu1  ;;  %v758_v52 = vpop.f32.mrb[0].mxu0 }
 0x161   :  { %v1311_v61 = vadd.f32 %v758_v52, %v463_v48  ;;  %v1061_v62 = vpop.f32.mrb[1].mxu1  ;;  %v1166_v7 = vpop.f32.mrb[1].mxu0 }
 0x163   :  { %v762_v14 = vmax.f32 %v1311_v61, 1e-24 }
 0x165   :  { %1327 = vrsqrt.f32 %v762_v14 }
 0x16f   :  { %v1328_v18 = vpop.eup %1327 }
 0x170   :  { %v764_v1 = vmul.f32 %v1328_v18, %v1614_v55 }
 0x172   :  { %v772_v21 = vmul.f32 %v854_v20, %v764_v1 }
 0x174   :  { %773 = vst [vmem:[#allocation7] sm:$0xff] %v772_v21 }
 0x175   :  { %1384 = shalt.err (!%p1381_p6)
}
 0x176   :  { %s1385_s9 = scalar_lea.hbm %s1905_s2, 128 }
 0x177   :  { %p1386_p7 = scmp.ne.s32.totalorder %s1905_s2, %s1385_s9  ;;  %p1389_p8 = scmp.lt.u32.totalorder %s1385_s9, %s1905_s2 }
 0x179   :  { %p1391_p9 = pnand %p1389_p8, %p1386_p7 }
 0x17b   :  { %1394 = shalt.err (!%p1391_p9)
}
 0x17c   :  { %783 = dma.vmem_to_hbm [thread:$0]  %s781_s5, 128, %s1905_s2, [#allocation4]  }
 0x17d   :  { %1399 = dma.done.wait [#allocation4], 128  }
 0x17e   :  { %1400 = vsyncadd [#allocation4], 4294967168 }
 0x17f   :  { %787 = vsyncpa [#allocation3], 1 }
 0x180   :  { %788 = vsyncpa [#allocation6], 1 }
 0x181   :  { %789 = vsyncpa [#allocation4], 1 }

</bundles_post_ra>
